<compile_context>
chip_gen: v7x
topology: tpu7x:2x2x1
jax: 0.10.0
libtpu: 0.0.40
codegen_flags: <defaults>
</compile_context>

<pallas_src>
import jax
import jax.numpy as jnp
from jax.experimental import pallas as pl
from jax.experimental.pallas import tpu as pltpu


LANE = 128      # TPU lane width: pad out dim (10) -> 128 for lane-dense stores
K_TILE = 2048   # K (in_nodes) tile; safe across v5e/v6e/v7x VMEM budgets
TB_MAX = 512    # batch-tile cap so v7x's two TensorCores both get work


def _round_up(x, m):
    return (x + m - 1) // m * m


def _pick_batch_tile(B):
    """Rows per batch tile: multiple of 16 (bf16 packs 16 sublanes/vreg),
    capped at TB_MAX, >=2 tiles once B is large enough (v7x has 2 TCs), and
    chosen to minimize zero-padded batch rows (wasted HBM traffic)."""
    if B <= 16:
        return 16
    tb_cap = _round_up(B, 16) if B < 64 else _round_up((B + 1) // 2, 16)
    tb_cap = min(TB_MAX, tb_cap)
    best_tb, best_pad = 16, _round_up(B, 16)
    tb = 32
    while tb <= tb_cap:
        pad = _round_up(B, tb)
        if pad <= best_pad:          # tie -> prefer larger tile (fewer grid steps)
            best_tb, best_pad = tb, pad
        tb += 16
    return best_tb


# ------------------------------ kernels ------------------------------

def _linear_relu_kernel(x_ref, w_ref, b_ref, o_ref):
    """Single K step: whole reduction fits one tile -> no accumulator scratch."""
    x = x_ref[...].astype(w_ref.dtype)                    # bf16 feed to the MXU
    y = jnp.dot(x, w_ref[...], preferred_element_type=jnp.float32)
    o_ref[...] = jnp.maximum(y + b_ref[...], 0.0).astype(o_ref.dtype)


def _linear_relu_kernel_acc(x_ref, w_ref, b_ref, o_ref, acc_ref):
    """K tiled on grid axis 1 ("arbitrary") with an f32 VMEM accumulator."""
    k = pl.program_id(1)

    @pl.when(k == 0)
    def _init():
        acc_ref[...] = jnp.zeros_like(acc_ref)

    acc_ref[...] += jnp.dot(x_ref[...].astype(w_ref.dtype), w_ref[...],
                            preferred_element_type=jnp.float32)

    @pl.when(k == pl.num_programs(1) - 1)
    def _finalize():
        o_ref[...] = jnp.maximum(acc_ref[...] + b_ref[...], 0.0).astype(o_ref.dtype)


# ------------------------------ wrapper ------------------------------

def init_core_params(weight, bias, *, compute_dtype=jnp.bfloat16, k_tile=K_TILE):
    """One-time parameter prep (hoisted out of the per-call path):
       pad out 10 -> 128 and K to a k_tile multiple, pre-transpose to
       [K_pad, out_pad] so the kernel issues a plain jnp.dot, and cast to the
       compute dtype (bf16 by default: half the weight HBM traffic)."""
    out_nodes, in_nodes = weight.shape
    out_pad = _round_up(out_nodes, LANE)
    k_pad = in_nodes if in_nodes <= k_tile else _round_up(in_nodes, k_tile)
    w_p = (jnp.zeros((k_pad, out_pad), compute_dtype)
           .at[:in_nodes, :out_nodes].set(weight.T.astype(compute_dtype)))
    b_p = (jnp.zeros((1, out_pad), jnp.float32)
           .at[0, :out_nodes].set(bias.astype(jnp.float32)))
    return {
        "w_padded": w_p, "b_padded": b_p,
        "weight": weight, "bias": bias,        # unpadded, for the tiny-problem XLA path
        "in_nodes": in_nodes, "out_nodes": out_nodes,
        "k_pad": k_pad, "out_pad": out_pad, "k_tile": k_tile,
        "compute_dtype": compute_dtype,
    }


def core_forward(x, params, *, force_pallas=False):
    """relu(x @ W.T + b) with W in PyTorch [out, in] layout (pre-processed)."""
    B, in_nodes = x.shape
    assert in_nodes == params["in_nodes"]
    out_nodes, out_pad = params["out_nodes"], params["out_pad"]
    k_pad, k_tile = params["k_pad"], params["k_tile"]
    compute_dtype = params["compute_dtype"]

    # Tiny problems: kernel-launch overhead + 128-lane output amplification
    # dominate -> let XLA fuse the GEMM + bias + relu instead.
    if not force_pallas and B * in_nodes <= 32 * 1024:
        y = x @ params["weight"].T.astype(x.dtype) + params["bias"].astype(x.dtype)
        return jnp.maximum(y, 0.0)

    TB = _pick_batch_tile(B)
    B_pad = _round_up(B, TB)

    # Pad/cast activations only when required (padding is a full extra HBM pass
    # over x on an otherwise "stream x once" kernel); combine pad + bf16 cast.
    if (B_pad != B) or (k_pad != in_nodes):
        x_p = (jnp.zeros((B_pad, k_pad), compute_dtype)
               .at[:B, :in_nodes].set(x.astype(compute_dtype)))
    else:
        x_p = x   # kernel casts tiles to compute_dtype on the fly (VPU, under DMA)

    w_p, b_p = params["w_padded"], params["b_padded"]
    n_b = B_pad // TB
    n_k = k_pad // k_tile if k_pad > k_tile else 1

    w_bytes = w_p.size * w_p.dtype.itemsize
    cost = pl.CostEstimate(
        flops=2 * B_pad * k_pad * out_pad,
        transcendentals=0,
        bytes_accessed=(x_p.size * x_p.dtype.itemsize
                        + (w_bytes if n_k == 1 else n_b * w_bytes)
                        + B_pad * out_pad * x.dtype.itemsize),
    )

    if n_k == 1:
        out = pl.pallas_call(
            _linear_relu_kernel,
            out_shape=jax.ShapeDtypeStruct((B_pad, out_pad), x.dtype),
            grid=(n_b,),
            in_specs=[
                pl.BlockSpec((TB, k_pad), lambda i: (i, 0)),        # activations
                pl.BlockSpec((k_pad, out_pad), lambda i: (0, 0)),   # weight (resident)
                pl.BlockSpec((1, out_pad), lambda i: (0, 0)),       # bias (resident)
            ],
            out_specs=pl.BlockSpec((TB, out_pad), lambda i: (i, 0)),
            compiler_params=pltpu.CompilerParams(
                dimension_semantics=("parallel",),
            ),
            cost_estimate=cost,
        )(x_p, w_p, b_p)
    else:
        TK = k_tile
        out = pl.pallas_call(
            _linear_relu_kernel_acc,
            out_shape=jax.ShapeDtypeStruct((B_pad, out_pad), x.dtype),
            grid=(n_b, n_k),
            in_specs=[
                pl.BlockSpec((TB, TK), lambda i, k: (i, k)),
                pl.BlockSpec((TK, out_pad), lambda i, k: (k, 0)),
                pl.BlockSpec((1, out_pad), lambda i, k: (0, 0)),
            ],
            out_specs=pl.BlockSpec((TB, out_pad), lambda i, k: (i, 0)),
            scratch_shapes=[pltpu.VMEM((TB, out_pad), jnp.float32)],
            compiler_params=pltpu.CompilerParams(
                dimension_semantics=("parallel", "arbitrary"),
            ),
            cost_estimate=cost,
        )(x_p, w_p, b_p)

    # TODO(synk): in production, keep this slice fused into the consumer (or let
    # downstream ops read the padded slab) to avoid an extra pass over the output.
    return out[:B, :out_nodes]


if __name__ == "__main__":
    key = jax.random.PRNGKey(0)
    k_x, k_w, k_b, k_x2, k_w2, k_b2 = jax.random.split(key, 6)

    # Shapes implied by the module: Linear(in_nodes, 10).
    batch, in_nodes, out_nodes = 8, 32, 10
    bound = 1.0 / (in_nodes ** 0.5)
    weight = jax.random.uniform(k_w, (out_nodes, in_nodes), jnp.float32, -bound, bound)
    bias = jax.random.uniform(k_b, (out_nodes,), jnp.float32, -bound, bound)
    x = jax.random.normal(k_x, (batch, in_nodes), jnp.float32)
    ref = jnp.maximum(x @ weight.T + bias, 0.0)

    # bf16 compute path (production default) through the Pallas kernel.
    params = init_core_params(weight, bias)
    out = jax.block_until_ready(core_forward(x, params, force_pallas=True))
    assert out.shape == (batch, out_nodes)
    assert jnp.allclose(out, ref, atol=2e-2, rtol=2e-2)

    # f32 compute path through the same kernel for a tight numerical check.
    params32 = init_core_params(weight, bias, compute_dtype=jnp.float32)
    out32 = jax.block_until_ready(core_forward(x, params32, force_pallas=True))
    assert jnp.allclose(out32, ref, atol=1e-5, rtol=1e-5)

    # Exercise the K-tiled accumulator path (in_nodes > K_TILE) with ragged B.
    b2, in2 = 100, K_TILE + 128
    bound2 = 1.0 / (in2 ** 0.5)
    w2 = jax.random.uniform(k_w2, (out_nodes, in2), jnp.float32, -bound2, bound2)
    b2v = jax.random.uniform(k_b2, (out_nodes,), jnp.float32, -bound2, bound2)
    x2 = jax.random.normal(k_x2, (b2, in2), jnp.float32)
    p2 = init_core_params(w2, b2v)
    out2 = jax.block_until_ready(core_forward(x2, p2, force_pallas=True))
    ref2 = jnp.maximum(x2 @ w2.T + b2v, 0.0)
    assert out2.shape == (b2, out_nodes)
    assert jnp.allclose(out2, ref2, atol=5e-2, rtol=5e-2)

    print("KERNEL_OK")
</pallas_src>

<mosaic_0001>
module attributes {stable_mosaic.version = 11 : i64} {
  func.func @_linear_relu_kernel(%arg0: i32, %arg1: memref<16x32xbf16, #tpu.memory_space<vmem>>, %arg2: memref<32x128xbf16, #tpu.memory_space<vmem>>, %arg3: memref<1x128xf32, #tpu.memory_space<vmem>>, %arg4: memref<16x128xf32, #tpu.memory_space<vmem>>) attributes {dimension_semantics = [#tpu.dimension_semantics<parallel>], iteration_bounds = array<i64: 1>, scalar_prefetch = 0 : i64, scratch_operands = 0 : i64, tpu.core_type = #tpu.core_type<tc>, window_params = [{transform_indices = @transform_0, window_bounds = array<i64: 16, 32>}, {pipeline_mode = #tpu.pipeline_mode<synchronous>, transform_indices = @transform_1, window_bounds = array<i64: 32, 128>}, {pipeline_mode = #tpu.pipeline_mode<synchronous>, transform_indices = @transform_2, window_bounds = array<i64: 1, 128>}, {transform_indices = @transform_3, window_bounds = array<i64: 16, 128>}]} {
    %c0 = arith.constant 0 : index
    %c0_0 = arith.constant 0 : index
    %0 = vector.load %arg1[%c0, %c0_0] : memref<16x32xbf16, #tpu.memory_space<vmem>>, vector<16x32xbf16>
    %c0_1 = arith.constant 0 : index
    %c0_2 = arith.constant 0 : index
    %1 = vector.load %arg2[%c0_1, %c0_2] : memref<32x128xbf16, #tpu.memory_space<vmem>>, vector<32x128xbf16>
    %cst = arith.constant dense<0.000000e+00> : vector<16x128xf32>
    %2 = tpu.matmul %0, %1, %cst {dimension_numbers = #tpu.dot_dimension_numbers<[1], [0], [0], [1], [0, 0, 1, 1], [], []>} : vector<16x32xbf16>, vector<32x128xbf16>, vector<16x128xf32> -> vector<16x128xf32>
    %c0_3 = arith.constant 0 : index
    %c0_4 = arith.constant 0 : index
    %3 = vector.load %arg3[%c0_3, %c0_4] : memref<1x128xf32, #tpu.memory_space<vmem>>, vector<1x128xf32>
    %4 = vector.broadcast %3 : vector<1x128xf32> to vector<16x128xf32>
    %5 = arith.addf %2, %4 : vector<16x128xf32>
    %cst_5 = arith.constant 0.000000e+00 : f32
    %6 = vector.broadcast %cst_5 : f32 to vector<16x128xf32>
    %7 = arith.maximumf %5, %6 : vector<16x128xf32>
    %c0_6 = arith.constant 0 : index
    %c0_7 = arith.constant 0 : index
    %8 = vector.load %arg4[%c0_6, %c0_7] : memref<16x128xf32, #tpu.memory_space<vmem>>, vector<16x128xf32>
    tpu.vector_store %arg4[%c0_6, %c0_7], %7 {strides = array<i32>} : memref<16x128xf32, #tpu.memory_space<vmem>>, vector<16x128xf32>,
    return
  }
  func.func @transform_0(%arg0: i32) -> (i32, i32) {
    %c0_i32 = arith.constant 0 : i32
    %c0_i32_0 = arith.constant 0 : i32
    return %arg0, %c0_i32 : i32, i32
  }
  func.func @transform_1(%arg0: i32) -> (i32, i32) {
    %c0_i32 = arith.constant 0 : i32
    %c0_i32_0 = arith.constant 0 : i32
    %c0_i32_1 = arith.constant 0 : i32
    return %c0_i32, %c0_i32_0 : i32, i32
  }
  func.func @transform_2(%arg0: i32) -> (i32, i32) {
    %c0_i32 = arith.constant 0 : i32
    %c0_i32_0 = arith.constant 0 : i32
    %c0_i32_1 = arith.constant 0 : i32
    return %c0_i32, %c0_i32_0 : i32, i32
  }
  func.func @transform_3(%arg0: i32) -> (i32, i32) {
    %c0_i32 = arith.constant 0 : i32
    %c0_i32_0 = arith.constant 0 : i32
    return %arg0, %c0_i32 : i32, i32
  }
}

</mosaic_0001>

<bundles_post_ra>
// kernel: tpu_custom_call.1
= control target key start
LH: loop header
LB: loop body
LE: loop exit
PB: predicated region body
PF: predicated region fallthrough
CT: control target
= control target key end

     0   :  { %8 = vsyncpa [#allocation3], 0  ;;  %s309_s0 = inlined_call_operand.hbm [shape: bf16[16,32], index: 0, kind: input, shape index: {}]   ;;  %s310_s1 = inlined_call_operand.hbm [shape: bf16[32,128], index: 1, kind: input, shape index: {}]   ;;  %s311_s2 = inlined_call_operand.vmem [shape: f32[1,128], index: 2, kind: input, shape index: {}]   ;;  %s312_s3 = inlined_call_operand.hbm [shape: f32[16,128], index: 3, kind: output, shape index: {}]  }
   0x1   :  { %9 = vsyncpa [#allocation6], 0 }
   0x2   :  { %10 = vsyncpa [#allocation4], 0  ;;  %s241_s12 = smov [#allocation2]   ;;  %s169_s16 = scalar_lea.hbm %s309_s0, 128 }
   0x3   :  { %s16_s13 = sshll.u32 %s241_s12, 4  ;;  %p170_p0 = scmp.ne.s32.totalorder %s309_s0, %s169_s16  ;;  %s17_s13 = int_to_ptr.vmem [resolvable:$true] %s16_s13 }
   0x4   :  { %p173_p1 = scmp.lt.u32.totalorder %s169_s16, %s309_s0 }
   0x6   :  { %p175_p2 = pnand %p173_p1, %p170_p0 }
   0x8   :  { %178 = shalt.err (!%p175_p2)
}
   0x9   :  { %s179_s21 = scalar_lea.vmem %s17_s13, 128  ;;  %p184_p4 = scmp.lt.s32.totalorder %s17_s13, %s17_s13 }
   0xa   :  { %p180_p3 = scmp.ne.s32.totalorder %s17_s13, %s179_s21  ;;  %p185_p5 = scmp.lt.s32.totalorder %s179_s21, %s179_s21 }
   0xc   :  { %p186_p6 = por %p185_p5, %p184_p4 }
   0xe   :  { %p187_p7 = pnand %p186_p6, %p180_p3 }
  0x10   :  { %190 = shalt.err (!%p187_p7)
}
  0x11   :  { %s242_s22 = smov 64   ;;  %s243_s23 = smov 4  }
  0x12   :  { %22 = dma.hbm_to_vmem [thread:$0]  %s309_s0, 128, %s17_s13, [#allocation3], %s242_s22, %s242_s22, %s243_s23  }
  0x13   :  { %s244_s26 = smov [#allocation5]   ;;  %s191_s30 = scalar_lea.hbm %s310_s1, 256 }
  0x14   :  { %s28_s27 = sshll.u32 %s244_s26, 4  ;;  %p192_p8 = scmp.ne.s32.totalorder %s310_s1, %s191_s30  ;;  %s29_s27 = int_to_ptr.vmem [resolvable:$true] %s28_s27 }
  0x15   :  { %p195_p9 = scmp.lt.u32.totalorder %s191_s30, %s310_s1 }
  0x17   :  { %p197_p10 = pnand %p195_p9, %p192_p8 }
  0x19   :  { %200 = shalt.err (!%p197_p10)
}
  0x1a   :  { %s201_s8 = scalar_lea.vmem %s29_s27, 256  ;;  %p206_p12 = scmp.lt.s32.totalorder %s29_s27, %s29_s27 }
  0x1b   :  { %p202_p11 = scmp.ne.s32.totalorder %s29_s27, %s201_s8  ;;  %p207_p13 = scmp.lt.s32.totalorder %s201_s8, %s201_s8 }
  0x1d   :  { %p208_p0 = por %p207_p13, %p206_p12 }
  0x1f   :  { %p209_p1 = pnand %p208_p0, %p202_p11 }
  0x21   :  { %212 = shalt.err (!%p209_p1)
}
  0x22   :  { %34 = dma.hbm_to_vmem [thread:$0]  %s310_s1, 256, %s29_s27, [#allocation6], %s242_s22, %s242_s22, %s243_s23  }
  0x23   :  { %235 = dma.done.wait [#allocation3], 128  }
  0x24   :  { %236 = vsyncadd [#allocation3], 4294967168 }
  0x25   :  { %237 = dma.done.wait [#allocation6], 256  }
  0x26   :  { %238 = vsyncadd [#allocation6], 4294967040  ;;  %v245_v0 = vmov 0.0   ;;  %vm246_vm0 = vmmov 0   ;;  %v166_v1 = vld [vmem:[#allocation5] sm:$0xff]   ;;  %v167_v2 = vld [vmem:[#allocation5 + $0x8] sm:$0xff]  }
  0x27   :  { %149 = vmatprep.subr.bf16.mxu0 %v245_v0  ;;  %153 = vmatprep.mubr.msk.bf16.mxu0 %vm246_vm0, %v245_v0  ;;  %v168_v3 = vld [vmem:[#allocation2] sm:$0xff]   ;;  %vm74_vm1 = vcmask 261120   ;;  %s247_s1 = smov [#allocation7]  }
  0x28   :  { %150 = vmatpush3.bf16.msra.mxu0 %v166_v1  ;;  %v141_v4 = vld [vmem:[%s311_s2] ss:$0 sm:$0xff]  ;;  %s128_s12 = sshll.u32 %s247_s1, 4  ;;  %s129_s12 = int_to_ptr.vmem [resolvable:$true] %s128_s12 }
  0x29   :  { %151 = vmatprep.subr.bf16.mxu0 %v245_v0  ;;  %s213_s13 = scalar_lea.vmem %s129_s12, 256  ;;  %p218_p3 = scmp.lt.s32.totalorder %s129_s12, %s129_s12 }
  0x2a   :  { %p214_p2 = scmp.ne.s32.totalorder %s129_s12, %s213_s13  ;;  %p219_p4 = scmp.lt.s32.totalorder %s213_s13, %s213_s13 }
  0x2c   :  { %152 = vmatpush3.bf16.msra.mxu0 %v167_v2  ;;  %p220_p5 = por %p219_p4, %p218_p3 }
  0x2e   :  { %p221_p6 = pnand %p220_p5, %p214_p2 }
  0x2f   :  { %154 = vmatmul.mubr.msk.bf16.vlgmr.msra.gmra.mrb[0].mxu0 %vm74_vm1, %v168_v3 }
 0x102   :  { %v112_v5 = vpop.f32.mrb[0].mxu0 }
 0x103   :  { %v113_v6 = vadd.f32 %v141_v4, %v112_v5  ;;  %v155_v7 = vpop.f32.mrb[1].mxu0 }
 0x104   :  { %v115_v8 = vpop.f32.mrb[2].mxu0 }
 0x105   :  { %v119_v9 = vmax.f32 %v113_v6, 0.0  ;;  %v116_v10 = vadd.f32 %v141_v4, %v115_v8  ;;  %v156_v11 = vpop.f32.mrb[3].mxu0 }
 0x107   :  { %121 = vst [vmem:[#allocation7] sm:$0xff] %v119_v9  ;;  %v120_v12 = vmax.f32 %v116_v10, 0.0 }
 0x109   :  { %122 = vst [vmem:[#allocation7 + $0x8] sm:$0xff] %v120_v12 }
 0x10a   :  { %224 = shalt.err (!%p221_p6)
}
 0x10b   :  { %s225_s15 = scalar_lea.hbm %s312_s3, 256 }
 0x10c   :  { %p226_p7 = scmp.ne.s32.totalorder %s312_s3, %s225_s15  ;;  %p229_p8 = scmp.lt.u32.totalorder %s225_s15, %s312_s3 }
 0x10e   :  { %p231_p9 = pnand %p229_p8, %p226_p7 }
 0x110   :  { %234 = shalt.err (!%p231_p9)
}
 0x111   :  { %s248_s20 = smov 128   ;;  %s249_s21 = smov 8  }
 0x112   :  { %134 = dma.vmem_to_hbm [thread:$0]  %s129_s12, 256, %s312_s3, [#allocation4], %s248_s20, %s248_s20, %s249_s21  }
 0x113   :  { %239 = dma.done.wait [#allocation4], 256  }
 0x114   :  { %240 = vsyncadd [#allocation4], 4294967040 }
 0x115   :  { %138 = vsyncpa [#allocation3], 1 }
 0x116   :  { %139 = vsyncpa [#allocation6], 1 }
 0x117   :  { %140 = vsyncpa [#allocation4], 1 }

</bundles_post_ra>
